<compile_context>
chip_gen: v7x
topology: tpu7x:2x2x1
jax: 0.10.0
libtpu: 0.0.40
codegen_flags: <defaults>
</compile_context>

<pallas_src>
import functools
import math

import jax
import jax.numpy as jnp
from jax import lax
from jax.experimental import pallas as pl
from jax.experimental.pallas import tpu as pltpu

# Large finite negative mask value (avoids -inf arithmetic hazards).
_MASK_VALUE = -1e30


def _flash_attention_kernel(q_ref, k_ref, v_ref, o_ref,
                            m_ref, l_ref, acc_ref, qs_ref,
                            *, masked: bool, scale: float,
                            tq: int, tkv: int, mxu_dtype):
    """One (batch, q-tile, kv-tile) grid step.

    Refs (leading batch dim squeezed by the BlockSpec):
      q_ref: (TQ, D)   k_ref, v_ref: (TKV, D)   o_ref: (TQ, D)
    Scratch (persists across the innermost KV grid axis):
      m_ref, l_ref: (TQ, 1) f32   acc_ref: (TQ, D) f32   qs_ref: (TQ, D) mxu
    """
    qi = pl.program_id(1)
    ki = pl.program_id(2)
    n_kv = pl.num_programs(2)

    @pl.when(ki == 0)
    def _init():
        m_ref[...] = jnp.full(m_ref.shape, _MASK_VALUE, dtype=m_ref.dtype)
        l_ref[...] = jnp.zeros(l_ref.shape, dtype=l_ref.dtype)
        acc_ref[...] = jnp.zeros(acc_ref.shape, dtype=acc_ref.dtype)
        # Hoisted out of the per-KV-step path: scale q once per Q tile and
        # stage it in the dtype the MXU will consume.
        qs_ref[...] = (q_ref[...].astype(jnp.float32) * scale).astype(qs_ref.dtype)

    def _accumulate(apply_mask: bool):
        # 'qd,kd->qk': contract last dims of both operands -> no explicit k.T.
        s = lax.dot_general(
            qs_ref[...], k_ref[...].astype(mxu_dtype),
            dimension_numbers=(((1,), (1,)), ((), ())),
            preferred_element_type=jnp.float32)              # (TQ, TKV) f32

        if apply_mask:
            row = qi * tq + lax.broadcasted_iota(jnp.int32, (tq, tkv), 0)
            col = ki * tkv + lax.broadcasted_iota(jnp.int32, (tq, tkv), 1)
            # triu(ones, diagonal=1) == 1  <=>  col > row
            s = jnp.where(col > row, _MASK_VALUE, s)

        m_prev = m_ref[...]                                   # (TQ, 1)
        m_new = jnp.maximum(m_prev, jnp.max(s, axis=-1, keepdims=True))
        alpha = jnp.exp(m_prev - m_new)                       # (TQ, 1)
        p = jnp.exp(s - m_new)                                # (TQ, TKV) f32
        # TODO(synk): on v6e/v7x the XLU row-sum below could be offloaded to a
        # spare MXU output column (ones column appended to V) if this kernel
        # ever becomes XLU-bound.
        l_ref[...] = alpha * l_ref[...] + jnp.sum(p, axis=-1, keepdims=True)
        acc_ref[...] = alpha * acc_ref[...] + jnp.dot(
            p.astype(mxu_dtype), v_ref[...].astype(mxu_dtype),
            preferred_element_type=jnp.float32)
        m_ref[...] = m_new

    if masked:
        # Tile classification w.r.t. the causal (diagonal=1) mask.
        fully_visible = (ki + 1) * tkv - 1 <= qi * tq   # below diag: no mask
        contributes = ki * tkv < (qi + 1) * tq          # not entirely above diag
        on_diagonal = jnp.logical_and(contributes,
                                      jnp.logical_not(fully_visible))

        @pl.when(fully_visible)
        def _():
            _accumulate(apply_mask=False)

        @pl.when(on_diagonal)
        def _():
            _accumulate(apply_mask=True)
        # Tiles entirely above the diagonal: no compute; their K/V DMA is also
        # skipped because the BlockSpec index_map clamps the block index.
    else:
        _accumulate(apply_mask=False)

    @pl.when(ki == n_kv - 1)
    def _finalize():
        l = l_ref[...]
        # Guard: l > 0 always holds for the causal diagonal=1 mask, but this
        # keeps any future fully-masked-row variant finite.
        inv_l = pl.reciprocal(jnp.where(l > 0.0, l, 1.0), approx=True)
        o_ref[...] = (acc_ref[...] * inv_l).astype(o_ref.dtype)


def _pick_block(dim: int, preferred: int, sublane: int) -> int:
    """Largest block <= preferred dividing dim, preferring multiples of 128
    (full MXU passes / lane-dense stores), then of the dtype's sublane pack.
    Falls back to the full axis extent (always a legal block)."""
    if dim <= preferred:
        return dim
    for grain in (128, sublane):
        cand = (preferred // grain) * grain
        while cand >= grain:
            if dim % cand == 0:
                return cand
            cand -= grain
    return dim


def _vmem_limit_bytes(tq: int, tkv: int, d: int,
                      in_itemsize: int, mxu_itemsize: int) -> int:
    """Explicit VMEM budget derived from the chosen tiles, so growing the
    blocks stays safe on v7x (64 MiB physical VMEM; v5e/v6e have 128 MiB)."""
    io_tiles = 2 * (2 * tq * d + 2 * tkv * d) * in_itemsize   # dbl-buffered q,k,v,o
    scratch = tq * d * (4 + mxu_itemsize) + 8 * tq            # acc + scaled q + m,l
    intermediates = 6 * tq * tkv * 4                          # s/p f32 temporaries
    est = int(1.5 * (io_tiles + scratch + intermediates))
    return max(16 * 1024 * 1024, min(est, 40 * 1024 * 1024))


def self_attention(q, k, v, *, masked: bool = False,
                   block_q: int = 512, block_kv: int = 256,
                   mxu_dtype=jnp.bfloat16):
    """Pallas TPU implementation of SelfAttention.forward.

    q, k, v: (B, S, D) arrays. Returns (B, S, D).
    mxu_dtype: dtype of the matmul operands (accumulation is always f32).
      bf16 (default) is MXU-native on v5e/v6e/v7x; pass None to keep the
      input dtype (higher-precision path for f32 inputs).
    """
    assert q.ndim == 3 and q.shape == k.shape == v.shape
    B, S, D = q.shape
    out_dtype = q.dtype
    scale = 1.0 / math.sqrt(D)
    if mxu_dtype is None:
        mxu_dtype = q.dtype

    in_itemsize = jnp.dtype(q.dtype).itemsize
    sublane = max(8, 32 // in_itemsize)          # 8 f32 / 16 bf16 / 32 int8
    tq = _pick_block(S, block_q, sublane)
    tkv = _pick_block(S, block_kv, sublane)
    n_q = S // tq
    n_kv = S // tkv
    assert n_q * tq == S and n_kv * tkv == S

    kernel = functools.partial(_flash_attention_kernel, masked=masked,
                               scale=scale, tq=tq, tkv=tkv,
                               mxu_dtype=mxu_dtype)

    # Leading batch dim squeezed (None) -> kernel refs are 2-D tiles.
    # Last-dim block == D (full array extent) -> legal for any head dim, no
    # HBM padding needed.
    q_spec = pl.BlockSpec((None, tq, D), lambda b, qi, ki: (b, qi, 0))
    o_spec = pl.BlockSpec((None, tq, D), lambda b, qi, ki: (b, qi, 0))

    if masked:
        # Clamp the KV block index to the last block that contributes to this
        # Q tile.  For above-diagonal steps the block index repeats, so Pallas
        # does not re-issue the K/V copy -> the causal path saves DMA, not
        # just compute.
        def kv_index_map(b, qi, ki):
            last = ((qi + 1) * tq - 1) // tkv
            return (b, jnp.minimum(ki, last), 0)
    else:
        def kv_index_map(b, qi, ki):
            return (b, ki, 0)
    kv_spec = pl.BlockSpec((None, tkv, D), kv_index_map)

    out = pl.pallas_call(
        kernel,
        out_shape=jax.ShapeDtypeStruct((B, S, D), out_dtype),
        grid_spec=pltpu.PrefetchScalarGridSpec(
            num_scalar_prefetch=0,
            grid=(B, n_q, n_kv),
            in_specs=[q_spec, kv_spec, kv_spec],
            out_specs=o_spec,
            scratch_shapes=[
                pltpu.VMEM((tq, 1), jnp.float32),    # running max  m
                pltpu.VMEM((tq, 1), jnp.float32),    # running sum  l
                pltpu.VMEM((tq, D), jnp.float32),    # output accumulator
                pltpu.VMEM((tq, D), mxu_dtype),      # scaled q (hoisted)
            ],
        ),
        compiler_params=pltpu.CompilerParams(
            # Batch leads so the v7x megacore split is over B first (balanced
            # even under the triangular causal workload); KV is the reduction
            # axis and must be "arbitrary".
            dimension_semantics=("parallel", "parallel", "arbitrary"),
            vmem_limit_bytes=_vmem_limit_bytes(
                tq, tkv, D, in_itemsize, jnp.dtype(mxu_dtype).itemsize),
        ),
    )(q, k, v)
    return out


def _reference(q, k, v, masked=False):
    d_k = k.shape[-1]
    scores = jnp.einsum("bqd,bkd->bqk",
                        q.astype(jnp.float32),
                        k.astype(jnp.float32)) / math.sqrt(d_k)
    if masked:
        s = scores.shape[-1]
        mask = jnp.triu(jnp.ones((s, s)), k=1)
        scores = jnp.where(mask == 1, -jnp.inf, scores)
    norm = jax.nn.softmax(scores, axis=-1)
    return jnp.einsum("bqk,bkd->bqd", norm, v.astype(jnp.float32))


if __name__ == "__main__":
    root = jax.random.PRNGKey(0)

    # (B, S, D, dtype, block_q, block_kv, mxu_dtype, tol)
    cases = [
        # Small module-shape demo; input-dtype (f32) MXU operands = tight check.
        (2, 8, 32, jnp.float32, 512, 256, None, 5e-3),
        # Multi-tile grid exercising init/accumulate/finalize + causal
        # DMA/compute skip, with the default bf16 MXU-operand fast path.
        (2, 256, 32, jnp.float32, 128, 128, jnp.bfloat16, 3e-2),
        # bf16 inputs, larger grid, 16-row sublane packing.
        (1, 512, 64, jnp.bfloat16, 256, 128, jnp.bfloat16, 4e-2),
    ]

    for idx, (B, S, D, dt, bq, bkv, mxu_dt, tol) in enumerate(cases):
        kq, kk, kv_key = jax.random.split(jax.random.fold_in(root, idx), 3)
        q = jax.random.normal(kq, (B, S, D), dtype=jnp.float32).astype(dt)
        k = jax.random.normal(kk, (B, S, D), dtype=jnp.float32).astype(dt)
        v = jax.random.normal(kv_key, (B, S, D), dtype=jnp.float32).astype(dt)

        for masked in (False, True):
            out = self_attention(q, k, v, masked=masked,
                                 block_q=bq, block_kv=bkv, mxu_dtype=mxu_dt)
            jax.block_until_ready(out)
            ref = _reference(q, k, v, masked=masked)
            max_err = jnp.max(jnp.abs(out.astype(jnp.float32) - ref))
            assert max_err < tol, (
                f"mismatch: case={idx} masked={masked} max_err={max_err}")

    print("KERNEL_OK")
</pallas_src>

<mosaic_0001>
module attributes {stable_mosaic.version = 11 : i64} {
  func.func @_flash_attention_kernel(%arg0: i32, %arg1: i32, %arg2: i32, %arg3: memref<1x8x32xf32, #tpu.memory_space<vmem>>, %arg4: memref<1x8x32xf32, #tpu.memory_space<vmem>>, %arg5: memref<1x8x32xf32, #tpu.memory_space<vmem>>, %arg6: memref<1x8x32xf32, #tpu.memory_space<vmem>>, %arg7: memref<8x1xf32, #tpu.memory_space<vmem>>, %arg8: memref<8x1xf32, #tpu.memory_space<vmem>>, %arg9: memref<8x32xf32, #tpu.memory_space<vmem>>, %arg10: memref<8x32xf32, #tpu.memory_space<vmem>>) attributes {dimension_semantics = [#tpu.dimension_semantics<parallel>, #tpu.dimension_semantics<parallel>, #tpu.dimension_semantics<arbitrary>], iteration_bounds = array<i64: 2, 1, 1>, scalar_prefetch = 0 : i64, scratch_operands = 4 : i64, tpu.core_type = #tpu.core_type<tc>, window_params = [{transform_indices = @transform_0, window_bounds = array<i64: 1, 8, 32>}, {transform_indices = @transform_1, window_bounds = array<i64: 1, 8, 32>}, {transform_indices = @transform_2, window_bounds = array<i64: 1, 8, 32>}, {transform_indices = @transform_3, window_bounds = array<i64: 1, 8, 32>}]} {
    %c0_i32 = arith.constant 0 : i32
    %0 = arith.cmpi eq, %arg2, %c0_i32 : i32
    %1 = arith.extui %0 : i1 to i32
    %c0_i32_0 = arith.constant 0 : i32
    %2 = arith.cmpi ne, %1, %c0_i32_0 : i32
    scf.if %2 {
      %cst_25 = arith.constant -1.000000e+30 : f32
      %34 = vector.broadcast %cst_25 : f32 to vector<8x1xf32>
      %c0_26 = arith.constant 0 : index
      %c0_27 = arith.constant 0 : index
      %35 = vector.load %arg7[%c0_26, %c0_27] : memref<8x1xf32, #tpu.memory_space<vmem>>, vector<8x1xf32>
      tpu.vector_store %arg7[%c0_26, %c0_27], %34 {strides = array<i32>} : memref<8x1xf32, #tpu.memory_space<vmem>>, vector<8x1xf32>,
      %cst_28 = arith.constant 0.000000e+00 : f32
      %36 = vector.broadcast %cst_28 : f32 to vector<8x1xf32>
      %c0_29 = arith.constant 0 : index
      %c0_30 = arith.constant 0 : index
      %37 = vector.load %arg8[%c0_29, %c0_30] : memref<8x1xf32, #tpu.memory_space<vmem>>, vector<8x1xf32>
      tpu.vector_store %arg8[%c0_29, %c0_30], %36 {strides = array<i32>} : memref<8x1xf32, #tpu.memory_space<vmem>>, vector<8x1xf32>,
      %cst_31 = arith.constant 0.000000e+00 : f32
      %38 = vector.broadcast %cst_31 : f32 to vector<8x32xf32>
      %c0_32 = arith.constant 0 : index
      %c0_33 = arith.constant 0 : index
      %39 = vector.load %arg9[%c0_32, %c0_33] : memref<8x32xf32, #tpu.memory_space<vmem>>, vector<8x32xf32>
      tpu.vector_store %arg9[%c0_32, %c0_33], %38 {strides = array<i32>} : memref<8x32xf32, #tpu.memory_space<vmem>>, vector<8x32xf32>,
      %c0_34 = arith.constant 0 : index
      %c0_35 = arith.constant 0 : index
      %c0_36 = arith.constant 0 : index
      %40 = vector.load %arg3[%c0_34, %c0_35, %c0_36] : memref<1x8x32xf32, #tpu.memory_space<vmem>>, vector<1x8x32xf32>
      %41 = vector.shape_cast %40 : vector<1x8x32xf32> to vector<8x32xf32>
      %cst_37 = arith.constant 0.176776692 : f32
      %42 = vector.broadcast %cst_37 : f32 to vector<8x32xf32>
      %43 = arith.mulf %41, %42 : vector<8x32xf32>
      %c0_38 = arith.constant 0 : index
      %c0_39 = arith.constant 0 : index
      %44 = vector.load %arg10[%c0_38, %c0_39] : memref<8x32xf32, #tpu.memory_space<vmem>>, vector<8x32xf32>
      tpu.vector_store %arg10[%c0_38, %c0_39], %43 {strides = array<i32>} : memref<8x32xf32, #tpu.memory_space<vmem>>, vector<8x32xf32>,
    } else {
    }
    %c0 = arith.constant 0 : index
    %c0_1 = arith.constant 0 : index
    %3 = vector.load %arg10[%c0, %c0_1] : memref<8x32xf32, #tpu.memory_space<vmem>>, vector<8x32xf32>
    %c0_2 = arith.constant 0 : index
    %c0_3 = arith.constant 0 : index
    %c0_4 = arith.constant 0 : index
    %4 = vector.load %arg4[%c0_2, %c0_3, %c0_4] : memref<1x8x32xf32, #tpu.memory_space<vmem>>, vector<1x8x32xf32>
    %5 = vector.shape_cast %4 : vector<1x8x32xf32> to vector<8x32xf32>
    %cst = arith.constant dense<0.000000e+00> : vector<8x8xf32>
    %6 = tpu.matmul %3, %5, %cst {dimension_numbers = #tpu.dot_dimension_numbers<[1], [1], [0], [0], [0, 0, 1, 0], [], []>} : vector<8x32xf32>, vector<8x32xf32>, vector<8x8xf32> -> vector<8x8xf32>
    %c0_5 = arith.constant 0 : index
    %c0_6 = arith.constant 0 : index
    %7 = vector.load %arg7[%c0_5, %c0_6] : memref<8x1xf32, #tpu.memory_space<vmem>>, vector<8x1xf32>
    %cst_7 = arith.constant dense<0xFF800000> : vector<8xf32>
    %8 = vector.multi_reduction <maximumf>, %6, %cst_7 [1] : vector<8x8xf32> to vector<8xf32>
    %9 = vector.shape_cast %8 : vector<8xf32> to vector<8x1xf32>
    %10 = arith.maximumf %7, %9 : vector<8x1xf32>
    %11 = arith.subf %7, %10 : vector<8x1xf32>
    %12 = math.exp %11 : vector<8x1xf32>
    %13 = vector.broadcast %10 : vector<8x1xf32> to vector<8x8xf32>
    %14 = arith.subf %6, %13 : vector<8x8xf32>
    %15 = math.exp %14 : vector<8x8xf32>
    %c0_8 = arith.constant 0 : index
    %c0_9 = arith.constant 0 : index
    %16 = vector.load %arg8[%c0_8, %c0_9] : memref<8x1xf32, #tpu.memory_space<vmem>>, vector<8x1xf32>
    %17 = arith.mulf %12, %16 : vector<8x1xf32>
    %cst_10 = arith.constant dense<0.000000e+00> : vector<8xf32>
    %18 = vector.multi_reduction <add>, %15, %cst_10 [1] : vector<8x8xf32> to vector<8xf32>
    %19 = vector.shape_cast %18 : vector<8xf32> to vector<8x1xf32>
    %20 = arith.addf %17, %19 : vector<8x1xf32>
    %c0_11 = arith.constant 0 : index
    %c0_12 = arith.constant 0 : index
    %21 = vector.load %arg8[%c0_11, %c0_12] : memref<8x1xf32, #tpu.memory_space<vmem>>, vector<8x1xf32>
    tpu.vector_store %arg8[%c0_11, %c0_12], %20 {strides = array<i32>} : memref<8x1xf32, #tpu.memory_space<vmem>>, vector<8x1xf32>,
    %c0_13 = arith.constant 0 : index
    %c0_14 = arith.constant 0 : index
    %22 = vector.load %arg9[%c0_13, %c0_14] : memref<8x32xf32, #tpu.memory_space<vmem>>, vector<8x32xf32>
    %23 = vector.broadcast %12 : vector<8x1xf32> to vector<8x32xf32>
    %24 = arith.mulf %23, %22 : vector<8x32xf32>
    %c0_15 = arith.constant 0 : index
    %c0_16 = arith.constant 0 : index
    %c0_17 = arith.constant 0 : index
    %25 = vector.load %arg5[%c0_15, %c0_16, %c0_17] : memref<1x8x32xf32, #tpu.memory_space<vmem>>, vector<1x8x32xf32>
    %26 = vector.shape_cast %25 : vector<1x8x32xf32> to vector<8x32xf32>
    %cst_18 = arith.constant dense<0.000000e+00> : vector<8x32xf32>
    %27 = tpu.matmul %15, %26, %cst_18 {dimension_numbers = #tpu.dot_dimension_numbers<[1], [0], [0], [1], [0, 0, 1, 1], [], []>} : vector<8x8xf32>, vector<8x32xf32>, vector<8x32xf32> -> vector<8x32xf32>
    %28 = arith.addf %24, %27 : vector<8x32xf32>
    %c0_19 = arith.constant 0 : index
    %c0_20 = arith.constant 0 : index
    %29 = vector.load %arg9[%c0_19, %c0_20] : memref<8x32xf32, #tpu.memory_space<vmem>>, vector<8x32xf32>
    tpu.vector_store %arg9[%c0_19, %c0_20], %28 {strides = array<i32>} : memref<8x32xf32, #tpu.memory_space<vmem>>, vector<8x32xf32>,
    %c0_21 = arith.constant 0 : index
    %c0_22 = arith.constant 0 : index
    %30 = vector.load %arg7[%c0_21, %c0_22] : memref<8x1xf32, #tpu.memory_space<vmem>>, vector<8x1xf32>
    tpu.vector_store %arg7[%c0_21, %c0_22], %10 {strides = array<i32>} : memref<8x1xf32, #tpu.memory_space<vmem>>, vector<8x1xf32>,
    %c0_i32_23 = arith.constant 0 : i32
    %31 = arith.cmpi eq, %arg2, %c0_i32_23 : i32
    %32 = arith.extui %31 : i1 to i32
    %c0_i32_24 = arith.constant 0 : i32
    %33 = arith.cmpi ne, %32, %c0_i32_24 : i32
    scf.if %33 {
      %c0_25 = arith.constant 0 : index
      %c0_26 = arith.constant 0 : index
      %34 = vector.load %arg8[%c0_25, %c0_26] : memref<8x1xf32, #tpu.memory_space<vmem>>, vector<8x1xf32>
      %cst_27 = arith.constant 0.000000e+00 : f32
      %35 = vector.broadcast %cst_27 : f32 to vector<8x1xf32>
      %36 = arith.cmpf ogt, %34, %35 : vector<8x1xf32>
      %cst_28 = arith.constant 1.000000e+00 : f32
      %37 = vector.broadcast %cst_28 : f32 to vector<8x1xf32>
      %38 = arith.select %36, %34, %37 : vector<8x1xi1>, vector<8x1xf32>
      %39 = tpu.reciprocal %38 {approx = true} : vector<8x1xf32> -> vector<8x1xf32>
      %c0_29 = arith.constant 0 : index
      %c0_30 = arith.constant 0 : index
      %40 = vector.load %arg9[%c0_29, %c0_30] : memref<8x32xf32, #tpu.memory_space<vmem>>, vector<8x32xf32>
      %41 = vector.broadcast %39 : vector<8x1xf32> to vector<8x32xf32>
      %42 = arith.mulf %40, %41 : vector<8x32xf32>
      %c0_31 = arith.constant 0 : index
      %c0_32 = arith.constant 0 : index
      %c0_33 = arith.constant 0 : index
      %43 = vector.load %arg6[%c0_31, %c0_32, %c0_33] : memref<1x8x32xf32, #tpu.memory_space<vmem>>, vector<1x8x32xf32>
      %44 = vector.shape_cast %43 : vector<1x8x32xf32> to vector<8x32xf32>
      %45 = vector.shape_cast %42 : vector<8x32xf32> to vector<1x8x32xf32>
      tpu.vector_store %arg6[%c0_31, %c0_32, %c0_33], %45 {strides = array<i32>} : memref<1x8x32xf32, #tpu.memory_space<vmem>>, vector<1x8x32xf32>,
    } else {
    }
    return
  }
  func.func @transform_0(%arg0: i32, %arg1: i32, %arg2: i32) -> (i32, i32, i32) {
    %c0_i32 = arith.constant 0 : i32
    %c0_i32_0 = arith.constant 0 : i32
    return %arg0, %arg1, %c0_i32 : i32, i32, i32
  }
  func.func @transform_1(%arg0: i32, %arg1: i32, %arg2: i32) -> (i32, i32, i32) {
    %c0_i32 = arith.constant 0 : i32
    %c0_i32_0 = arith.constant 0 : i32
    return %arg0, %arg2, %c0_i32 : i32, i32, i32
  }
  func.func @transform_2(%arg0: i32, %arg1: i32, %arg2: i32) -> (i32, i32, i32) {
    %c0_i32 = arith.constant 0 : i32
    %c0_i32_0 = arith.constant 0 : i32
    return %arg0, %arg2, %c0_i32 : i32, i32, i32
  }
  func.func @transform_3(%arg0: i32, %arg1: i32, %arg2: i32) -> (i32, i32, i32) {
    %c0_i32 = arith.constant 0 : i32
    %c0_i32_0 = arith.constant 0 : i32
    return %arg0, %arg1, %c0_i32 : i32, i32, i32
  }
}

</mosaic_0001>

<bundles_post_ra>
// kernel: tpu_custom_call.1
= control target key start
LH: loop header
LB: loop body
LE: loop exit
PB: predicated region body
PF: predicated region fallthrough
CT: control target
= control target key end

     0   :  { %s1248_s0 = inlined_call_operand.hbm [shape: f32[2,8,32], index: 0, kind: input, shape index: {}]   ;;  %s1249_s1 = inlined_call_operand.hbm [shape: f32[2,8,32], index: 1, kind: input, shape index: {}]   ;;  %s1250_s2 = inlined_call_operand.hbm [shape: f32[2,8,32], index: 2, kind: input, shape index: {}]   ;;  %s1251_s3 = inlined_call_operand.hbm [shape: f32[2,8,32], index: 3, kind: output, shape index: {}]  }
   0x1   :  { %1257 = sst [smem:[#allocation19_spill]] %s1249_s1 }
   0x2   :  { %8 = vsyncpa [#allocation7], 0 }
   0x3   :  { %10 = vsyncpa [#allocation7 + $0x1], 0 }
   0x4   :  { %11 = vsyncpa [#allocation10], 0 }
   0x5   :  { %13 = vsyncpa [#allocation10 + $0x1], 0 }
   0x6   :  { %14 = vsyncpa [#allocation8], 0 }
   0x7   :  { %16 = vsyncpa [#allocation8 + $0x1], 0  ;;  %s971_s12 = smov 0   ;;  %s973_s13 = smov 0  }
   0x8   :  { %s975_s14 = smov 0   ;;  %s977_s15 = smov 0  }
   0x9   :  { %s979_s16 = smov 0   ;;  %s981_s17 = smov 0  }
   0xa LB: > { %1258 = sst [smem:[#allocation16_spill]] %s937_s16  ;;  %s1002_s18 = sadd.s32 4294967295, %s941_s17   ;;  %s941_s17 = sphi %s981_s17, %s22_s17   ;;  %s937_s16 = sphi %s979_s16, %s1279_s16   ;;  %s933_s15 = sphi %s977_s15, %s1278_s15   ;;  %s929_s14 = sphi %s975_s14, %s1282_s14   ;;  %s925_s13 = sphi %s973_s13, %s1281_s13   ;;  %s921_s12 = sphi %s971_s12, %s1280_s12  }
   0xb   : > { %s646_s19 = sadd.s32 4294967294, %s941_s17   ;;  %s41_s20 = sadd.s32 1, %s937_s16 }
   0xc   : > { %s50_s21 = sadd.s32 1, %s929_s14  ;;  %p43_p0 = scmp.ge.s32.totalorder %s41_s20, 2 }
   0xd   : > { %p57_p1 = scmp.ne.s32.totalorder %s929_s14, %s925_s13  ;;  %p58_p2 = scmp.eq.s32.totalorder %s941_s17, 0 }
   0xe   : > { %p63_p3 = scmp.ne.s32.totalorder %s925_s13, %s921_s12  ;;  %s1284_s20 = smov (%p43_p0, %s41_s20), 0 }
   0xf   : > { %1259 = sst [smem:[#allocation17_spill]] %s1284_s20  ;;  %p1014_p4 = por %p58_p2, %p57_p1 }
  0x10   : > { %p64_p5 = scmp.eq.s32.totalorder %s1002_s18, 0  ;;  %s45_s23 = ssub.s32 %s937_s16, %s1284_s20 }
  0x11   : > { %p145_p6 = scmp.eq.s32.totalorder %s1002_s18, 1  ;;  %p48_p7 = scmp.eq.s32.totalorder %s45_s23, 0 }
  0x12   : > { %p1022_p8 = por %p64_p5, %p63_p3  ;;  %p151_p10 = scmp.eq.s32.totalorder %s646_s19, 1 }
  0x13   : > { %p1026_p9 = por %p145_p6, %p57_p1  ;;  %p703_p13 = scmp.lt.s32.totalorder %s941_s17, 2 }
  0x14   : > { %s1261_s24 = scalar_select %p1022_p8, 1, 0 }
  0x15   : > { %s1262_s25 = scalar_select %p1026_p9, 1, 0 }
  0x16   : > { %s1031_s26 = scalar_select %p48_p7, %s929_s14, %s50_s21  }
  0x17   : > { %p1033_p11 = por %p151_p10, %p63_p3  ;;  %s171_s28 = sand.u32 1, %s929_s14  }
  0x18   : > { %1263 = sst [smem:[#allocation18_spill]] %s1031_s26  ;;  %s1042_s29 = sshll.u32 %s171_s28, 3 }
  0x19   : > { %s1264_s27 = scalar_select %p1033_p11, 1, 0 }
  0x1a   : > { %s1045_s30 = sshll.u32 %s937_s16, 7  ;;  %p1049_p0 = pnand %p703_p13, %p1014_p4 }
  0x1b   : > { %s190_s5 = sand.u32 1, %s941_s17   ;;  %s1266_s1 = sld [smem:[#allocation19_spill]] }
  0x1c   : > { %s1265_s4 = scalar_select %p1049_p0, 1, 0 }
  0x1d   : > { %s194_s9 = scalar_lea.vmem [#allocation9], %s1042_s29  ;;  %s1065_s11 = scalar_lea.sflag [#allocation10], %s190_s5 }
  0x1e   : > { %s202_s10 = sshll.u32 %s194_s9, 4  ;;  %p1071_p4 = pneg %p1049_p0  ;;  %s1062_s10 = int_to_ptr.vmem [resolvable:$true] %s202_s10 }
  0x21   : > { %s1058_s8 = scalar_lea.hbm %s1266_s1, %s1045_s30  ;;  %s770_s6 = scalar_lea.hbm %s1266_s1, 256 }
  0x22   : > { %s765_s19 = scalar_lea.hbm %s1058_s8, 128  ;;  %p771_p7 = scmp.lt.u32.totalorder %s1058_s8, %s1266_s1 }
  0x23   : > { %p766_p3 = scmp.ne.s32.totalorder %s1058_s8, %s765_s19  ;;  %p772_p10 = scmp.lt.u32.totalorder %s770_s6, %s765_s19 }
  0x24   : > { %p774_p12 = scmp.lt.u32.totalorder %s765_s19, %s1058_s8 }
  0x25   : > { %p768_p5 = pnand %p1071_p4, %p766_p3  ;;  %p773_p13 = por %p772_p10, %p771_p7 }
  0x27   : > { %p769_p6 = pneg %p768_p5  ;;  %p775_p1 = por %p774_p12, %p773_p13 }
  0x29   : > { %p776_p2 = pnand %p775_p1, %p769_p6 }
  0x2b   : > { %779 = shalt.err (!%p776_p2)
}
  0x2c   : > { %s780_s5 = scalar_lea.vmem %s1062_s10, 128  ;;  %s943_s22 = smov [#allocation9]  }
  0x2d   : > { %p781_p3 = scmp.ne.s32.totalorder %s1062_s10, %s780_s5  ;;  %s785_s23 = sshll.u32 %s943_s22, 4  ;;  %s786_s23 = int_to_ptr.vmem [resolvable:$false] %s785_s23 }
  0x2e   : > { %s787_s7 = scalar_lea.vmem %s786_s23, 256  ;;  %p788_p9 = scmp.lt.s32.totalorder %s1062_s10, %s786_s23 }
  0x2f   : > { %p783_p5 = pnand %p781_p3, %p1071_p4  ;;  %p789_p8 = scmp.lt.s32.totalorder %s787_s7, %s780_s5 }
  0x31   : > { %p784_p11 = pneg %p783_p5  ;;  %p790_p7 = por %p789_p8, %p788_p9 }
  0x33   : > { %p791_p10 = pnand %p790_p7, %p784_p11 }
  0x35   : > { %794 = shalt.err (!%p791_p10)
}
  0x36   : > { %695 = dma.hbm_to_vmem [thread:$0]  (!%p1049_p0), %s1058_s8, 128, %s1062_s10, %s1065_s11  }
  0x37   : > { %p1268_p12 = scmp.lt.s32.totalorder %s941_s17, 3  ;;  %p1269_p1 = scmp.ge.s32.totalorder %s941_s17, 1 }
  0x38   : > { %s1107_s5 = scalar_lea.hbm %s1248_s0, %s1045_s30  ;;  %s175_s22 = scalar_lea.vmem [#allocation6], %s1042_s29 }
  0x39   : > { %p1099_p2 = pnand %p1269_p1, %p1268_p12  ;;  %s183_s23 = sshll.u32 %s175_s22, 4  ;;  %s1110_s23 = int_to_ptr.vmem [resolvable:$true] %s183_s23 }
  0x3a   : > { %s1116_s7 = scalar_lea.hbm %s1250_s2, %s1045_s30  ;;  %s172_s1 = scalar_lea.sflag [#allocation7], %s171_s28 }
  0x3b   : > { %s1270_s19 = scalar_select %p1099_p2, 1, 0 }
  0x3c   : > { %s795_s20 = scalar_lea.hbm %s1107_s5, 128  ;;  %s800_s16 = scalar_lea.hbm %s1248_s0, 256 }
  0x3d   : > { %p796_p8 = scmp.ne.s32.totalorder %s1107_s5, %s795_s20  ;;  %p801_p6 = scmp.lt.u32.totalorder %s1107_s5, %s1248_s0 }
  0x3e   : > { %p802_p13 = scmp.lt.u32.totalorder %s800_s16, %s795_s20  ;;  %p804_p5 = scmp.lt.u32.totalorder %s795_s20, %s1107_s5 }
  0x3f   : > { %p798_p9 = pnand %p796_p8, %p1071_p4 }
  0x40   : > { %p803_p3 = por %p802_p13, %p801_p6 }
  0x41   : > { %p799_p11 = pneg %p798_p9 }
  0x42   : > { %p805_p7 = por %p804_p5, %p803_p3 }
  0x44   : > { %p806_p10 = pnand %p805_p7, %p799_p11 }
  0x46   : > { %809 = shalt.err (!%p806_p10)
}
  0x47   : > { %s810_s28 = scalar_lea.vmem %s1110_s23, 128  ;;  %s944_s30 = smov [#allocation6]  }
  0x48   : > { %p811_p12 = scmp.ne.s32.totalorder %s1110_s23, %s810_s28  ;;  %s815_s8 = sshll.u32 %s944_s30, 4  ;;  %s816_s8 = int_to_ptr.vmem [resolvable:$false] %s815_s8 }
  0x49   : > { %s817_s26 = scalar_lea.vmem %s816_s8, 256  ;;  %p818_p9 = scmp.lt.s32.totalorder %s1110_s23, %s816_s8 }
  0x4a   : > { %p813_p1 = pnand %p811_p12, %p1071_p4  ;;  %p819_p2 = scmp.lt.s32.totalorder %s817_s26, %s810_s28 }
  0x4c   : > { %p814_p8 = pneg %p813_p1  ;;  %p820_p6 = por %p819_p2, %p818_p9 }
  0x4e   : > { %p821_p13 = pnand %p820_p6, %p814_p8 }
  0x50   : > { %824 = shalt.err (!%p821_p13)
}
  0x51   : > { %692 = dma.hbm_to_vmem [thread:$0]  (!%p1049_p0), %s1107_s5, 128, %s1110_s23, %s172_s1  }
  0x52   : > { %s213_s16 = scalar_lea.vmem [#allocation11], %s1042_s29  ;;  %s825_s10 = scalar_lea.hbm %s1116_s7, 128 }
  0x53   : > { %s221_s20 = sshll.u32 %s213_s16, 4  ;;  %p826_p11 = scmp.ne.s32.totalorder %s1116_s7, %s825_s10  ;;  %s222_s20 = int_to_ptr.vmem [resolvable:$true] %s221_s20 }
  0x54   : > { %s830_s22 = scalar_lea.hbm %s1250_s2, 256  ;;  %p831_p5 = scmp.lt.u32.totalorder %s1116_s7, %s1250_s2 }
  0x55   : > { %p828_p2 = pnand %p826_p11, %p1071_p4  ;;  %p832_p7 = scmp.lt.u32.totalorder %s830_s22, %s825_s10 }
  0x56   : > { %p834_p12 = scmp.lt.u32.totalorder %s825_s10, %s1116_s7 }
  0x57   : > { %p829_p3 = pneg %p828_p2  ;;  %p833_p10 = por %p832_p7, %p831_p5 }
  0x59   : > { %p835_p1 = por %p834_p12, %p833_p10 }
  0x5b   : > { %p836_p8 = pnand %p835_p1, %p829_p3 }
  0x5d   : > { %839 = shalt.err (!%p836_p8)
}
  0x5e   : > { %s840_s1 = scalar_lea.vmem %s222_s20, 128  ;;  %s945_s29 = smov [#allocation11]  }
  0x5f   : > { %p841_p9 = scmp.ne.s32.totalorder %s222_s20, %s840_s1  ;;  %s845_s5 = sshll.u32 %s945_s29, 4  ;;  %s846_s5 = int_to_ptr.vmem [resolvable:$false] %s845_s5 }
  0x60   : > { %s847_s23 = scalar_lea.vmem %s846_s5, 256  ;;  %p848_p11 = scmp.lt.s32.totalorder %s222_s20, %s846_s5 }
  0x61   : > { %p843_p6 = pnand %p841_p9, %p1071_p4  ;;  %p849_p2 = scmp.lt.s32.totalorder %s847_s23, %s840_s1 }
  0x63   : > { %p844_p13 = pneg %p843_p6  ;;  %p850_p0 = por %p849_p2, %p848_p11 }
  0x65   : > { %p851_p5 = pnand %p850_p0, %p844_p13 }
  0x67   : > { %854 = shalt.err (!%p851_p5)
}
  0x68   : > { %p1271_p7 = scmp.ne.s32.totalorder %s1265_s4, 0  ;;  %p1272_p3 = scmp.ne.s32.totalorder %s1270_s19, 0 }
  0x69   : > { %s1163_s21 = sand.u32 (!%p1272_p3), 1, %s925_s13   ;;  %p1273_p0 = scmp.ne.s32.totalorder (!%p1272_p3), %s1261_s24, 0 }
  0x6a   : > { %698 = dma.hbm_to_vmem [thread:$0]  (!%p1271_p7), %s1116_s7, 128, %s222_s20, %s1065_s11  }
  0x6b   : > { %230 = sbr.rel (%p1272_p3) target bundleno = 939 (0x3ab), region = 32  ;;  %s1166_s8 = sshll.u32 (!%p1272_p3), %s1163_s21, 3 }
  0x6c   : > { %s233_s26 = scalar_lea.sflag (!%p1272_p3), [#allocation7], %s1163_s21  ;;  %s236_s16 = scalar_lea.vmem (!%p1272_p3), [#allocation6], %s1166_s8 }
  0x72   : > { %908 = dma.done.wait (%p1273_p0), %s233_s26, 128  }
  0x73   : > { %910 = vsyncadd (%p1273_p0), %s233_s26, 4294967168  ;;  %s241_s4 = sand.u32 1, %s1002_s18   ;;  %s245_s19 = scalar_lea.vmem [#allocation9], %s1166_s8 }
  0x74   : > { %s242_s11 = scalar_lea.sflag [#allocation10], %s241_s4 }
  0x75   : > { %912 = dma.done.wait (%p1273_p0), %s242_s11, 256  }
  0x76   : > { %914 = vsyncadd (%p1273_p0), %s242_s11, 4294967040  ;;  %vm294_vm0 = vcmask 261120   ;;  %v946_v0 = vmov 0.0   ;;  %vm947_vm1 = vmmov 0   ;;  %v296_v1 = vld [vmem:[%s236_s16] sm:$0xff]  ;;  %v300_v2 = vld [vmem:[%s245_s19] sm:$0xff] }
  0x77   : > { %671 = vmatprep.subr.mxu0 %v946_v0  ;;  %295 = vst.msk [vmem:[#allocation4] sm:$0xff] %vm294_vm0, %v946_v0  ;;  %673 = vmatprep.mubr.msk.f32.mxu0 %vm947_vm1, %v946_v0  ;;  %v297_v3 = vmul.f32 0.17677669, %v296_v1  ;;  %vm291_vm2 = vcmask 7168   ;;  %v948_v5 = vmov -1e+30  }
  0x78   : > { %676 = vmatprep.subr.mxu1 %v946_v0  ;;  %678 = vmatprep.mubr.msk.f32.mxu1 %vm947_vm1, %v946_v0  ;;  %292 = vst.msk [vmem:[#allocation2] sm:$0xff] %vm291_vm2, %v948_v5  ;;  %293 = vst.msk [vmem:[#allocation3] sm:$0xff] %vm291_vm2, %v946_v0  ;;  %vm379_vm3 = vcmask 64512   ;;  %v949_v9 = vmov 0   ;;  %s254_s18 = scalar_lea.vmem [#allocation11], %s1166_s8  ;;  %s664_s24 = sshll.u32 %s933_s15, 7 }
  0x79   : > { %672 = vmatpush3.xpose.msk.msra.mxu0 %vm294_vm0, %v300_v2  ;;  %298 = vst.msk [vmem:[#allocation5] sm:$0xff] %vm294_vm0, %v297_v3  ;;  %757 = vset.pattern.permute.xlu0 %v949_v9  ;;  %v410_v14 = vld [vmem:[%s254_s18] sm:$0xff]  ;;  %s286_s7 = scalar_lea.vmem [#allocation12], %s1166_s8  ;;  %s1198_s9 = scalar_lea.hbm %s1251_s3, %s664_s24 }
  0x7a   : > { %758 = vset.pattern.permute.xlu1 %v949_v9  ;;  %677 = vmatpush3.msra.mxu1 %v410_v14  ;;  %s517_s20 = sshll.u32 %s286_s7, 4  ;;  %s503_s22 = scalar_lea.sflag [#allocation8], %s1163_s21  ;;  %s1200_s20 = int_to_ptr.vmem [resolvable:$true] %s517_s20 }
  0x7b   : > { %s855_s28 = scalar_lea.vmem %s1200_s20, 128  ;;  %p1274_p10 = scmp.ne.s32.totalorder %s1262_s25, 0 }
  0x7c   : > { %p856_p4 = scmp.ne.s32.totalorder %s1200_s20, %s855_s28  ;;  %s950_s15 = smov [#allocation12]  }
  0x7d   : > { %s859_s30 = sshll.u32 %s950_s15, 4  ;;  %s860_s30 = int_to_ptr.vmem [resolvable:$false] %s859_s30 }
  0x7e   : > { %v403_v29 = vld [vmem:[#allocation4] sm:$0xff]  ;;  %p857_p12 = pnand %p856_p4, %p1274_p10  ;;  %s861_s1 = scalar_lea.vmem %s860_s30, 256 }
  0x7f   : > { %v378_v10 = vld [vmem:[#allocation2] sm:$0xff]  ;;  %v395_v22 = vld [vmem:[#allocation3] sm:$0xff]  ;;  %p862_p8 = scmp.lt.s32.totalorder %s1200_s20, %s860_s30  ;;  %p863_p9 = scmp.lt.s32.totalorder %s861_s1, %s855_s28 }
  0x80   : > { %v299_v4 = vld [vmem:[#allocation5] sm:$0xff]  ;;  %p858_p1 = pneg %p857_p12 }
  0x81   : > { %674 = vmatmul.mubr.msk.f32.vlgmr.msra.gmra.mrb[0].mxu0 %vm294_vm0, %v299_v4  ;;  %p864_p6 = por %p863_p9, %p862_p8 }
  0x83   : > { %p865_p13 = pnand %p864_p6, %p858_p1 }
 0x154   : > { %v374_v6 = vpop.f32.mrb[0].mxu0 }
 0x155   : > { %v675_v7 = vpop.f32.mrb[1].mxu0  ;;  %v380_v8 = vsel %vm379_vm3, %v374_v6, -inf }
 0x156   : > { %381 = vmax.xlane.f32.xlu0 %v380_v8 }
 0x1e3   : > { %v382_v11 = vpop.xlane.xlu0 %381 }
 0x1e4   : > { %v383_v12 = vmax.f32 %v378_v10, %v382_v11 }
 0x1e6   : > { %v384_v13 = vsub.f32 %v378_v10, %v383_v12  ;;  %486 = vst.msk [vmem:[#allocation2] sm:$0xff] %vm291_vm2, %v383_v12  ;;  %389 = vperm.xlu0 %757, %v383_v12  }
 0x1e8   : > { %v385_v20 = vmul.f32 1.442695, %v384_v13 }
 0x265   : > { %v390_v15 = vpop.permute.xlu0 %389 }
 0x266   : > { %v392_v16 = vsub.f32 %v374_v6, %v390_v15 }
 0x268   : > { %v393_v17 = vmul.f32 1.442695, %v392_v16 }
 0x26a   : > { %759 = vpow2.f32 %v393_v17 }
 0x26b   : > { %761 = vpow2.f32 %v385_v20 }
 0x274   : > { %v760_v18 = vpop.eup %759 }
 0x275   : > { %679 = vmatmul.mubr.msk.f32.vlgmr.msra.gmra.mrb[0].mxu1 %vm379_vm3, %v760_v18  ;;  %v397_v19 = vsel %vm379_vm3, %v760_v18, 0.0  ;;  %v762_v21 = vpop.eup %761 }
 0x276   : > { %398 = vadd.xlane.f32.xlu1 %v397_v19  ;;  %v396_v23 = vmul.f32 %v762_v21, %v395_v22 }
 0x287   : > { %406 = vperm.xlu1 %758, %v762_v21  }
 0x303   : > { %v399_v24 = vpop.xlane.xlu1 %398 }
 0x304   : > { %v400_v25 = vadd.f32 %v399_v24, %v396_v23 }
 0x306   : > { %402 = vst.msk [vmem:[#allocation3] sm:$0xff] %vm291_vm2, %v400_v25 }
 0x307   : > { %v407_v30 = vpop.permute.xlu1 %406 }
 0x308   : > { %v409_v31 = vmul.f32 %v407_v30, %v403_v29 }
 0x30d   : > { %v490_v26 = vld [vmem:[#allocation3] sm:$0xff] }
 0x30e   : > { %vm491_vm4 = vcmp.gt.f32.partialorder %v490_v26, 0.0 }
 0x30f   : > { %v492_v27 = vsel %vm491_vm4, %v490_v26, 1.0 }
 0x310   : > { %763 = vrcp.f32 %v492_v27 }
 0x31a   : > { %v764_v28 = vpop.eup %763 }
 0x31b   : > { %497 = vperm.xlu1 %758, %v764_v28  }
 0x348   : > { %v480_v32 = vpop.f32.mrb[0].mxu1 }
 0x349   : > { %v484_v33 = vadd.f32 %v480_v32, %v409_v31  ;;  %v680_v34 = vpop.f32.mrb[1].mxu1 }
 0x34b   : > { %485 = vst.msk [vmem:[#allocation4] sm:$0xff] %vm294_vm0, %v484_v33 }
 0x352   : > { %v494_v35 = vld [vmem:[#allocation4] sm:$0xff] }
 0x39a   : > { %v498_v36 = vpop.permute.xlu1 %497 }
 0x39b   : > { %v500_v37 = vmul.f32 %v498_v36, %v494_v35 }
 0x39d   : > { %501 = vst.msk [vmem:[%s286_s7] sm:$0xff] %vm294_vm0, %v500_v37 }
 0x39e   : > { %868 = shalt.err (!%p865_p13)
}
 0x39f   : > { %s869_s29 = scalar_lea.hbm %s1198_s9, 128  ;;  %s873_s21 = scalar_lea.hbm %s1251_s3, 256 }
 0x3a0   : > { %p870_p11 = scmp.ne.s32.totalorder %s1198_s9, %s869_s29  ;;  %p874_p7 = scmp.lt.u32.totalorder %s1198_s9, %s1251_s3 }
 0x3a1   : > { %p875_p3 = scmp.lt.u32.totalorder %s873_s21, %s869_s29  ;;  %p877_p4 = scmp.lt.u32.totalorder %s869_s29, %s1198_s9 }
 0x3a2   : > { %p871_p2 = pnand %p870_p11, %p1274_p10 }
 0x3a3   : > { %p876_p0 = por %p875_p3, %p874_p7 }
 0x3a4   : > { %p872_p5 = pneg %p871_p2 }
 0x3a5   : > { %p878_p12 = por %p877_p4, %p876_p0 }
 0x3a7   : > { %p879_p1 = pnand %p878_p12, %p872_p5 }
 0x3a9   : > { %882 = shalt.err (!%p879_p1)
}
 0x3aa   : > { %687 = dma.vmem_to_hbm [thread:$0]  (%p1274_p10), %s1200_s20, 128, %s1198_s9, %s503_s22  }
 0x3ab PF: > { %s529_s16 = sand.u32 1, %s921_s12   ;;  %p1275_p8 = scmp.ne.s32.totalorder %s1264_s27, 0 }
 0x3ac   : > { %p1276_p9 = scmp.ge.s32.totalorder %s941_s17, 2  ;;  %s530_s4 = scalar_lea.sflag [#allocation8], %s529_s16 }
 0x3ae   : > { %p700_p6 = pnand %p1276_p9, %p1275_p8 }
 0x3b0   : > { %916 = dma.done.wait (!%p700_p6), %s530_s4, 128  }
 0x3b1   : > { %918 = vsyncadd (!%p700_p6), %s530_s4, 4294967168  ;;  %s22_s17 = sadd.s32 1, %s941_s17   ;;  %s1277_s25 = sld [smem:[#allocation18_spill]] }
 0x3b2   : > { %p19_p13 = scmp.ge.s32.totalorder %s22_s17, 4   ;;  %s1278_s15 = sld [smem:[#allocation16_spill]] }
 0x3b3   : > { %s1279_s16 = sld [smem:[#allocation17_spill]]  ;;  %s1280_s12 = smov %s925_s13 }
 0x3b4   : > { %s1281_s13 = smov %s929_s14  ;;  %21 = sbr.rel (!%p19_p13) target bundleno = 10 (0xa), region = 109 }
 0x3b7   : > { %s1282_s14 = smov %s1277_s25 }
 0x3bb   :  { %535 = vsyncpa [#allocation7], 1 }
 0x3bc   :  { %537 = vsyncpa [#allocation7 + $0x1], 1 }
 0x3bd   :  { %538 = vsyncpa [#allocation10], 1 }
 0x3be   :  { %540 = vsyncpa [#allocation10 + $0x1], 1 }
 0x3bf   :  { %541 = vsyncpa [#allocation8], 1 }
 0x3c0   :  { %543 = vsyncpa [#allocation8 + $0x1], 1 }

</bundles_post_ra>
